<compile_context>
chip_gen: v7x
topology: tpu7x:2x2x1
jax: 0.10.0
libtpu: 0.0.40
codegen_flags: <defaults>
</compile_context>

<pallas_src>
import jax
import jax.numpy as jnp
import numpy as np
from jax.experimental import pallas as pl
from jax.experimental.pallas import tpu as pltpu

EPS = 1e-5  # nn.BatchNorm2d default


def _round_up(x, m):
    return (x + m - 1) // m * m


# ---------------------------------------------------------------------------
# kernels
# ---------------------------------------------------------------------------
def conv_stats_kernel(x_ref, wb_ref, y_ref, st_ref, xt_ref):
    """Conv3x3 as ONE bf16 MXU matmul over a row-triple operand + BN partials.

    x_ref  : (B, H, W*Cin)   bf16, lane index = w*Cin + cin
    wb_ref : (3*K, W*Cout)   bf16 stacked banded weights, K = roundup(W*Cin,128)
    y_ref  : (B, H, W*Cout)  bf16 conv output (lane-dense)
    st_ref : (1, 2, W*Cout)  f32 per-tile [row-sum, row-sum-of-squares]
    xt_ref : (B*H, 3*K)      f32 scratch: [row h-1 | row h | row h+1] per tap
    """
    B, H, WCI = x_ref.shape
    WCO = y_ref.shape[2]
    K = xt_ref.shape[1] // 3

    # Zeroed every grid step: provides the H halo rows and the lane padding,
    # and stays correct when the parallel grid is megacore-sharded.
    xt_ref[...] = jnp.zeros(xt_ref.shape, xt_ref.dtype)

    for b in range(B):                                        # static unroll
        r0 = b * H
        img = x_ref[b].astype(jnp.float32)                    # (H, W*Cin)
        xt_ref[r0 + 1:r0 + H, 0:WCI] = img[0:H - 1, :]        # input row h-1
        xt_ref[r0:r0 + H, K:K + WCI] = img                    # input row h
        xt_ref[r0:r0 + H - 1, 2 * K:2 * K + WCI] = img[1:H, :]  # input row h+1

    acc = jnp.dot(xt_ref[...].astype(jnp.bfloat16), wb_ref[...],
                  preferred_element_type=jnp.float32)          # (B*H, W*Cout)
    y_ref[...] = acc.reshape(B, H, WCO).astype(y_ref.dtype)
    st_ref[0, 0:1, :] = jnp.sum(acc, axis=0, keepdims=True)
    st_ref[0, 1:2, :] = jnp.sum(acc * acc, axis=0, keepdims=True)


def bn_relu_conv_stats_kernel(y1_ref, s1_ref, wb_ref, y2_ref, st_ref, xt_ref):
    """(folded BN1 + ReLU) -> Conv3x3 (one bf16 matmul) -> BN2 partials.

    y1_ref : (B, H, W*C1)  bf16 stage-1 conv output (lane-dense)
    s1_ref : (2, W*C1)     f32: row 0 = scale tiled over lanes, row 1 = shift
    wb_ref : (3*K, W*C2)   bf16 stacked banded stage-2 weights (K = W*C1 here)
    y2_ref : (B, H, W*C2)  bf16
    st_ref : (1, 2, W*C2)  f32
    xt_ref : (B*H, 3*K)    f32 scratch
    """
    B, H, WC1 = y1_ref.shape
    WC2 = y2_ref.shape[2]
    K = xt_ref.shape[1] // 3

    xt_ref[...] = jnp.zeros(xt_ref.shape, xt_ref.dtype)
    scale = s1_ref[0:1, :]
    shift = s1_ref[1:2, :]

    for b in range(B):
        r0 = b * H
        # BatchNorm folded to one FMA + ReLU (lane-dense VPU work, f32).
        h = jnp.maximum(y1_ref[b].astype(jnp.float32) * scale + shift, 0.0)
        xt_ref[r0 + 1:r0 + H, 0:WC1] = h[0:H - 1, :]
        xt_ref[r0:r0 + H, K:K + WC1] = h
        xt_ref[r0:r0 + H - 1, 2 * K:2 * K + WC1] = h[1:H, :]

    acc = jnp.dot(xt_ref[...].astype(jnp.bfloat16), wb_ref[...],
                  preferred_element_type=jnp.float32)
    y2_ref[...] = acc.reshape(B, H, WC2).astype(y2_ref.dtype)
    st_ref[0, 0:1, :] = jnp.sum(acc, axis=0, keepdims=True)
    st_ref[0, 1:2, :] = jnp.sum(acc * acc, axis=0, keepdims=True)


def bn_relu_kernel(y_ref, s_ref, o_ref):
    """Final folded BN + ReLU on a big lane-dense (rows, W*C) tile."""
    o_ref[...] = jnp.maximum(
        y_ref[...].astype(jnp.float32) * s_ref[0:1, :] + s_ref[1:2, :], 0.0)


# ---------------------------------------------------------------------------
# wrapper glue
# ---------------------------------------------------------------------------
def _band_weights(w_oihw, W, padK):
    """OIHW 3x3 weights -> (3*padK, W*Cout) stacked banded matrix (bf16).

    Row block t (rows t*padK .. t*padK + W*Cin) multiplies input row h+t-1;
    within it, wb[w'*Cin+ci, w*Cout+co] = w[co, ci, t, w-w'+1] for |w'-w|<=1.
    Rows [W*Cin, padK) of each block are zero (match the operand lane pad).
    """
    Cout, Cin = w_oihw.shape[0], w_oihw.shape[1]
    wk = jnp.transpose(w_oihw, (2, 3, 1, 0)).astype(jnp.float32)  # (kh,kw,ci,co)
    wb = jnp.zeros((3, padK, W * Cout), jnp.float32)
    for kw in range(3):
        for w in range(W):
            wp = w + kw - 1                     # input column feeding output w
            if 0 <= wp < W:
                wb = wb.at[:, wp * Cin:(wp + 1) * Cin,
                           w * Cout:(w + 1) * Cout].set(wk[:, kw])
    return wb.reshape(3 * padK, W * Cout).astype(jnp.bfloat16)


def _bn_affine(st, gamma, beta, count, W, C):
    """Lane-dense [sum, sumsq] partials -> folded (scale, shift) tiled on lanes."""
    s = jnp.sum(st, axis=0).reshape(2, W, C).sum(axis=1)       # (2, C) f32
    mean = s[0] / count
    var = s[1] / count - mean * mean                           # biased (train BN)
    scale = gamma.astype(jnp.float32) * jax.lax.rsqrt(var + EPS)
    shift = beta.astype(jnp.float32) - mean * scale
    return jnp.stack([jnp.tile(scale, W), jnp.tile(shift, W)], axis=0)  # (2,W*C)


def _pick_batch_block(N, H, max_rows=256):
    """Largest B dividing N with an even grid >= 2 (v7x 2-TC) and B*H <= 256."""
    best = 1
    for b in range(1, N + 1):
        if N % b or b * H > max_rows:
            continue
        g = N // b
        if g >= 2 and g % 2 == 0:
            best = b
    return best


def _pick_row_tile(rows, lanes, target_bytes=2 << 20):
    """Largest multiple-of-8 divisor of `rows` with a tile near target size."""
    if rows % 8 != 0:
        return rows
    cap = max(8, min(rows, (target_bytes // (lanes * 4)) // 8 * 8))
    tr = 8
    for cand in range(8, cap + 1, 8):
        if rows % cand == 0:
            tr = cand
    return tr


def conv_block_forward(x_nchw, params):
    """Equivalent of conv_block.forward (training-mode BN) on an NCHW input."""
    w1, b1, g1, be1, w2, b2, g2, be2 = params
    # Conv biases are cancelled exactly by the training-mode BN mean
    # subtraction that follows -> dead work, dropped.
    del b1, b2

    N, Cin, H, W = x_nchw.shape
    C1, C2 = w1.shape[0], w2.shape[0]
    K1 = _round_up(W * Cin, 128)          # per-tap lane block, stage-1 operand
    K2 = _round_up(W * C1, 128)           # per-tap lane block, stage-2 operand
    B = _pick_batch_block(N, H)
    G = N // B

    # ---- layout glue (kept only because the module interface is NCHW) ----
    x = jnp.transpose(x_nchw, (0, 2, 3, 1)).reshape(N, H, W * Cin)
    x = x.astype(jnp.bfloat16)                                  # lane = w*Cin+ci

    wb1 = _band_weights(w1, W, K1)                              # (3*K1, W*C1)
    wb2 = _band_weights(w2, W, K2)                              # (3*K2, W*C2)

    cp = pltpu.CompilerParams(dimension_semantics=("parallel",),
                              vmem_limit_bytes=32 * 1024 * 1024)

    # ---- stage 1: conv1 (one MXU dot, M=B*H) + lane-dense BN1 partials ----
    y1, st1 = pl.pallas_call(
        conv_stats_kernel,
        grid=(G,),
        in_specs=[
            pl.BlockSpec((B, H, W * Cin), lambda n: (n, 0, 0)),
            pl.BlockSpec((3 * K1, W * C1), lambda n: (0, 0)),
        ],
        out_specs=[
            pl.BlockSpec((B, H, W * C1), lambda n: (n, 0, 0)),
            pl.BlockSpec((1, 2, W * C1), lambda n: (n, 0, 0)),
        ],
        out_shape=[
            jax.ShapeDtypeStruct((N, H, W * C1), jnp.bfloat16),
            jax.ShapeDtypeStruct((G, 2, W * C1), jnp.float32),
        ],
        scratch_shapes=[pltpu.VMEM((B * H, 3 * K1), jnp.float32)],
        compiler_params=cp,
    )(x, wb1)

    s1 = _bn_affine(st1, g1, be1, N * H * W, W, C1)             # (2, W*C1) f32

    # ---- stage 2: BN1+ReLU -> conv2 (one MXU dot) + BN2 partials ----
    y2, st2 = pl.pallas_call(
        bn_relu_conv_stats_kernel,
        grid=(G,),
        in_specs=[
            pl.BlockSpec((B, H, W * C1), lambda n: (n, 0, 0)),
            pl.BlockSpec((2, W * C1), lambda n: (0, 0)),
            pl.BlockSpec((3 * K2, W * C2), lambda n: (0, 0)),
        ],
        out_specs=[
            pl.BlockSpec((B, H, W * C2), lambda n: (n, 0, 0)),
            pl.BlockSpec((1, 2, W * C2), lambda n: (n, 0, 0)),
        ],
        out_shape=[
            jax.ShapeDtypeStruct((N, H, W * C2), jnp.bfloat16),
            jax.ShapeDtypeStruct((G, 2, W * C2), jnp.float32),
        ],
        scratch_shapes=[pltpu.VMEM((B * H, 3 * K2), jnp.float32)],
        compiler_params=cp,
    )(y1, s1, wb2)

    s2 = _bn_affine(st2, g2, be2, N * H * W, W, C2)             # (2, W*C2) f32

    # ---- stage 3: BN2 + ReLU on a lane-dense (N*H, W*C2) slab ----
    rows = N * H
    tr = _pick_row_tile(rows, W * C2)
    out_flat = pl.pallas_call(
        bn_relu_kernel,
        grid=(rows // tr,),
        in_specs=[
            pl.BlockSpec((tr, W * C2), lambda i: (i, 0)),
            pl.BlockSpec((2, W * C2), lambda i: (0, 0)),
        ],
        out_specs=pl.BlockSpec((tr, W * C2), lambda i: (i, 0)),
        out_shape=jax.ShapeDtypeStruct((rows, W * C2), jnp.float32),
        compiler_params=cp,
    )(y2.reshape(rows, W * C2), s2)

    out = out_flat.reshape(N, H, W, C2)
    return jnp.transpose(out, (0, 3, 1, 2))                     # NHWC -> NCHW


# ---------------------------------------------------------------------------
# pure-JAX reference (correctness check only)
# ---------------------------------------------------------------------------
def ref_forward(x_nchw, params):
    w1, b1, g1, be1, w2, b2, g2, be2 = params

    def conv(x, w, b):
        y = jax.lax.conv_general_dilated(
            x, w, window_strides=(1, 1), padding=((1, 1), (1, 1)),
            dimension_numbers=('NCHW', 'OIHW', 'NCHW'))
        return y + b[None, :, None, None]

    def bn_relu(x, g, be):
        mean = x.mean(axis=(0, 2, 3), keepdims=True)
        var = ((x - mean) ** 2).mean(axis=(0, 2, 3), keepdims=True)
        xhat = (x - mean) / jnp.sqrt(var + EPS)
        return jnp.maximum(xhat * g[None, :, None, None]
                           + be[None, :, None, None], 0.0)

    h = bn_relu(conv(x_nchw, w1, b1), g1, be1)
    return bn_relu(conv(h, w2, b2), g2, be2)


if __name__ == "__main__":
    N, Cin, H, W = 2, 4, 16, 16
    Cout = 8

    key = jax.random.PRNGKey(0)
    k_x, k_w1, k_b1, k_w2, k_b2 = jax.random.split(key, 5)

    x = jax.random.normal(k_x, (N, Cin, H, W), jnp.float32)

    # deterministic parameter init (shapes per nn.Conv2d / nn.BatchNorm2d)
    w1 = jax.random.normal(k_w1, (Cout, Cin, 3, 3), jnp.float32) / np.sqrt(Cin * 9)
    b1 = jax.random.normal(k_b1, (Cout,), jnp.float32) * 0.1
    w2 = jax.random.normal(k_w2, (Cout, Cout, 3, 3), jnp.float32) / np.sqrt(Cout * 9)
    b2 = jax.random.normal(k_b2, (Cout,), jnp.float32) * 0.1
    g1, be1 = jnp.ones((Cout,), jnp.float32), jnp.zeros((Cout,), jnp.float32)
    g2, be2 = jnp.ones((Cout,), jnp.float32), jnp.zeros((Cout,), jnp.float32)
    params = (w1, b1, g1, be1, w2, b2, g2, be2)

    fwd = jax.jit(conv_block_forward)
    out = jax.block_until_ready(fwd(x, params))
    assert out.shape == (N, Cout, H, W), out.shape

    ref = ref_forward(x, params)
    # bf16 MXU path: agreement with the f32 reference is bounded by bf16
    # rounding through two convolutions + two batch-norms.
    np.testing.assert_allclose(np.asarray(out), np.asarray(ref),
                               atol=1e-1, rtol=1e-1)
    print("KERNEL_OK")
</pallas_src>

<mosaic_0001>
module attributes {stable_mosaic.version = 11 : i64} {
  func.func @conv_stats_kernel(%arg0: i32, %arg1: memref<1x16x64xbf16, #tpu.memory_space<vmem>>, %arg2: memref<384x128xbf16, #tpu.memory_space<vmem>>, %arg3: memref<1x16x128xbf16, #tpu.memory_space<vmem>>, %arg4: memref<1x2x128xf32, #tpu.memory_space<vmem>>, %arg5: memref<16x384xf32, #tpu.memory_space<vmem>>) attributes {dimension_semantics = [#tpu.dimension_semantics<parallel>], iteration_bounds = array<i64: 2>, scalar_prefetch = 0 : i64, scratch_operands = 1 : i64, tpu.core_type = #tpu.core_type<tc>, window_params = [{transform_indices = @transform_0, window_bounds = array<i64: 1, 16, 64>}, {pipeline_mode = #tpu.pipeline_mode<synchronous>, transform_indices = @transform_1, window_bounds = array<i64: 384, 128>}, {transform_indices = @transform_2, window_bounds = array<i64: 1, 16, 128>}, {transform_indices = @transform_3, window_bounds = array<i64: 1, 2, 128>}]} {
    %cst = arith.constant 0.000000e+00 : f32
    %0 = vector.broadcast %cst : f32 to vector<16x384xf32>
    %c0 = arith.constant 0 : index
    %c0_0 = arith.constant 0 : index
    %1 = vector.load %arg5[%c0, %c0_0] : memref<16x384xf32, #tpu.memory_space<vmem>>, vector<16x384xf32>
    tpu.vector_store %arg5[%c0, %c0_0], %0 {strides = array<i32>} : memref<16x384xf32, #tpu.memory_space<vmem>>, vector<16x384xf32>,
    %c0_1 = arith.constant 0 : index
    %c0_2 = arith.constant 0 : index
    %c0_3 = arith.constant 0 : index
    %2 = vector.load %arg1[%c0_1, %c0_2, %c0_3] : memref<1x16x64xbf16, #tpu.memory_space<vmem>>, vector<1x16x64xbf16>
    %3 = vector.shape_cast %2 : vector<1x16x64xbf16> to vector<16x64xbf16>
    %4 = arith.extf %3 : vector<16x64xbf16> to vector<16x64xf32>
    %5 = vector.extract_strided_slice %4 {offsets = [0, 0], sizes = [15, 64], strides = [1, 1]} : vector<16x64xf32> to vector<15x64xf32>
    %c1 = arith.constant 1 : index
    %c0_4 = arith.constant 0 : index
    %6 = vector.load %arg5[%c1, %c0_4] : memref<16x384xf32, #tpu.memory_space<vmem>>, vector<15x64xf32>
    tpu.vector_store %arg5[%c1, %c0_4], %5 {strides = array<i32>} : memref<16x384xf32, #tpu.memory_space<vmem>>, vector<15x64xf32>,
    %c0_5 = arith.constant 0 : index
    %c128 = arith.constant 128 : index
    %7 = vector.load %arg5[%c0_5, %c128] : memref<16x384xf32, #tpu.memory_space<vmem>>, vector<16x64xf32>
    tpu.vector_store %arg5[%c0_5, %c128], %4 {strides = array<i32>} : memref<16x384xf32, #tpu.memory_space<vmem>>, vector<16x64xf32>,
    %8 = vector.extract_strided_slice %4 {offsets = [1, 0], sizes = [15, 64], strides = [1, 1]} : vector<16x64xf32> to vector<15x64xf32>
    %c0_6 = arith.constant 0 : index
    %c256 = arith.constant 256 : index
    %9 = vector.load %arg5[%c0_6, %c256] : memref<16x384xf32, #tpu.memory_space<vmem>>, vector<15x64xf32>
    tpu.vector_store %arg5[%c0_6, %c256], %8 {strides = array<i32>} : memref<16x384xf32, #tpu.memory_space<vmem>>, vector<15x64xf32>,
    %c0_7 = arith.constant 0 : index
    %c0_8 = arith.constant 0 : index
    %10 = vector.load %arg5[%c0_7, %c0_8] : memref<16x384xf32, #tpu.memory_space<vmem>>, vector<16x384xf32>
    %11 = arith.truncf %10 : vector<16x384xf32> to vector<16x384xbf16>
    %c0_9 = arith.constant 0 : index
    %c0_10 = arith.constant 0 : index
    %12 = vector.load %arg2[%c0_9, %c0_10] : memref<384x128xbf16, #tpu.memory_space<vmem>>, vector<384x128xbf16>
    %cst_11 = arith.constant dense<0.000000e+00> : vector<16x128xf32>
    %13 = tpu.matmul %11, %12, %cst_11 {dimension_numbers = #tpu.dot_dimension_numbers<[1], [0], [0], [1], [0, 0, 1, 1], [], []>} : vector<16x384xbf16>, vector<384x128xbf16>, vector<16x128xf32> -> vector<16x128xf32>
    %14 = vector.shape_cast %13 : vector<16x128xf32> to vector<1x16x128xf32>
    %15 = arith.truncf %14 : vector<1x16x128xf32> to vector<1x16x128xbf16>
    %c0_12 = arith.constant 0 : index
    %c0_13 = arith.constant 0 : index
    %c0_14 = arith.constant 0 : index
    %16 = vector.load %arg3[%c0_12, %c0_13, %c0_14] : memref<1x16x128xbf16, #tpu.memory_space<vmem>>, vector<1x16x128xbf16>
    tpu.vector_store %arg3[%c0_12, %c0_13, %c0_14], %15 {strides = array<i32>} : memref<1x16x128xbf16, #tpu.memory_space<vmem>>, vector<1x16x128xbf16>,
    %cst_15 = arith.constant dense<0.000000e+00> : vector<128xf32>
    %17 = vector.multi_reduction <add>, %13, %cst_15 [0] : vector<16x128xf32> to vector<128xf32>
    %18 = vector.shape_cast %17 : vector<128xf32> to vector<1x128xf32>
    %c0_16 = arith.constant 0 : index
    %c0_17 = arith.constant 0 : index
    %c0_18 = arith.constant 0 : index
    %19 = vector.load %arg4[%c0_16, %c0_17, %c0_18] : memref<1x2x128xf32, #tpu.memory_space<vmem>>, vector<1x1x128xf32>
    %20 = vector.shape_cast %19 : vector<1x1x128xf32> to vector<1x128xf32>
    %21 = vector.shape_cast %18 : vector<1x128xf32> to vector<1x1x128xf32>
    tpu.vector_store %arg4[%c0_16, %c0_17, %c0_18], %21 {strides = array<i32>} : memref<1x2x128xf32, #tpu.memory_space<vmem>>, vector<1x1x128xf32>,
    %22 = arith.mulf %13, %13 : vector<16x128xf32>
    %cst_19 = arith.constant dense<0.000000e+00> : vector<128xf32>
    %23 = vector.multi_reduction <add>, %22, %cst_19 [0] : vector<16x128xf32> to vector<128xf32>
    %24 = vector.shape_cast %23 : vector<128xf32> to vector<1x128xf32>
    %c0_20 = arith.constant 0 : index
    %c1_21 = arith.constant 1 : index
    %c0_22 = arith.constant 0 : index
    %25 = vector.load %arg4[%c0_20, %c1_21, %c0_22] : memref<1x2x128xf32, #tpu.memory_space<vmem>>, vector<1x1x128xf32>
    %26 = vector.shape_cast %25 : vector<1x1x128xf32> to vector<1x128xf32>
    %27 = vector.shape_cast %24 : vector<1x128xf32> to vector<1x1x128xf32>
    tpu.vector_store %arg4[%c0_20, %c1_21, %c0_22], %27 {strides = array<i32>} : memref<1x2x128xf32, #tpu.memory_space<vmem>>, vector<1x1x128xf32>,
    return
  }
  func.func @transform_0(%arg0: i32) -> (i32, i32, i32) {
    %c0_i32 = arith.constant 0 : i32
    %c0_i32_0 = arith.constant 0 : i32
    %c0_i32_1 = arith.constant 0 : i32
    return %arg0, %c0_i32, %c0_i32_0 : i32, i32, i32
  }
  func.func @transform_1(%arg0: i32) -> (i32, i32) {
    %c0_i32 = arith.constant 0 : i32
    %c0_i32_0 = arith.constant 0 : i32
    %c0_i32_1 = arith.constant 0 : i32
    return %c0_i32, %c0_i32_0 : i32, i32
  }
  func.func @transform_2(%arg0: i32) -> (i32, i32, i32) {
    %c0_i32 = arith.constant 0 : i32
    %c0_i32_0 = arith.constant 0 : i32
    %c0_i32_1 = arith.constant 0 : i32
    return %arg0, %c0_i32, %c0_i32_0 : i32, i32, i32
  }
  func.func @transform_3(%arg0: i32) -> (i32, i32, i32) {
    %c0_i32 = arith.constant 0 : i32
    %c0_i32_0 = arith.constant 0 : i32
    %c0_i32_1 = arith.constant 0 : i32
    return %arg0, %c0_i32, %c0_i32_0 : i32, i32, i32
  }
}

module attributes {stable_mosaic.version = 11 : i64} {
  func.func @bn_relu_kernel(%arg0: i32, %arg1: memref<32x128xbf16, #tpu.memory_space<vmem>>, %arg2: memref<2x128xf32, #tpu.memory_space<vmem>>, %arg3: memref<32x128xf32, #tpu.memory_space<vmem>>) attributes {dimension_semantics = [#tpu.dimension_semantics<parallel>], iteration_bounds = array<i64: 1>, scalar_prefetch = 0 : i64, scratch_operands = 0 : i64, tpu.core_type = #tpu.core_type<tc>, window_params = [{transform_indices = @transform_0, window_bounds = array<i64: 32, 128>}, {pipeline_mode = #tpu.pipeline_mode<synchronous>, transform_indices = @transform_1, window_bounds = array<i64: 2, 128>}, {transform_indices = @transform_2, window_bounds = array<i64: 32, 128>}]} {
    %c0 = arith.constant 0 : index
    %c0_0 = arith.constant 0 : index
    %0 = vector.load %arg1[%c0, %c0_0] : memref<32x128xbf16, #tpu.memory_space<vmem>>, vector<32x128xbf16>
    %1 = arith.extf %0 : vector<32x128xbf16> to vector<32x128xf32>
    %c0_1 = arith.constant 0 : index
    %c0_2 = arith.constant 0 : index
    %2 = vector.load %arg2[%c0_1, %c0_2] : memref<2x128xf32, #tpu.memory_space<vmem>>, vector<1x128xf32>
    %3 = vector.broadcast %2 : vector<1x128xf32> to vector<32x128xf32>
    %4 = arith.mulf %1, %3 : vector<32x128xf32>
    %c1 = arith.constant 1 : index
    %c0_3 = arith.constant 0 : index
    %5 = vector.load %arg2[%c1, %c0_3] : memref<2x128xf32, #tpu.memory_space<vmem>>, vector<1x128xf32>
    %6 = vector.broadcast %5 : vector<1x128xf32> to vector<32x128xf32>
    %7 = arith.addf %4, %6 : vector<32x128xf32>
    %cst = arith.constant 0.000000e+00 : f32
    %8 = vector.broadcast %cst : f32 to vector<32x128xf32>
    %9 = arith.maximumf %7, %8 : vector<32x128xf32>
    %c0_4 = arith.constant 0 : index
    %c0_5 = arith.constant 0 : index
    %10 = vector.load %arg3[%c0_4, %c0_5] : memref<32x128xf32, #tpu.memory_space<vmem>>, vector<32x128xf32>
    tpu.vector_store %arg3[%c0_4, %c0_5], %9 {strides = array<i32>} : memref<32x128xf32, #tpu.memory_space<vmem>>, vector<32x128xf32>,
    return
  }
  func.func @transform_0(%arg0: i32) -> (i32, i32) {
    %c0_i32 = arith.constant 0 : i32
    %c0_i32_0 = arith.constant 0 : i32
    return %arg0, %c0_i32 : i32, i32
  }
  func.func @transform_1(%arg0: i32) -> (i32, i32) {
    %c0_i32 = arith.constant 0 : i32
    %c0_i32_0 = arith.constant 0 : i32
    %c0_i32_1 = arith.constant 0 : i32
    return %c0_i32, %c0_i32_0 : i32, i32
  }
  func.func @transform_2(%arg0: i32) -> (i32, i32) {
    %c0_i32 = arith.constant 0 : i32
    %c0_i32_0 = arith.constant 0 : i32
    return %arg0, %c0_i32 : i32, i32
  }
}

module attributes {stable_mosaic.version = 11 : i64} {
  func.func @bn_relu_conv_stats_kernel(%arg0: i32, %arg1: memref<1x16x128xbf16, #tpu.memory_space<vmem>>, %arg2: memref<2x128xf32, #tpu.memory_space<vmem>>, %arg3: memref<384x128xbf16, #tpu.memory_space<vmem>>, %arg4: memref<1x16x128xbf16, #tpu.memory_space<vmem>>, %arg5: memref<1x2x128xf32, #tpu.memory_space<vmem>>, %arg6: memref<16x384xf32, #tpu.memory_space<vmem>>) attributes {dimension_semantics = [#tpu.dimension_semantics<parallel>], iteration_bounds = array<i64: 2>, scalar_prefetch = 0 : i64, scratch_operands = 1 : i64, tpu.core_type = #tpu.core_type<tc>, window_params = [{transform_indices = @transform_0, window_bounds = array<i64: 1, 16, 128>}, {pipeline_mode = #tpu.pipeline_mode<synchronous>, transform_indices = @transform_1, window_bounds = array<i64: 2, 128>}, {pipeline_mode = #tpu.pipeline_mode<synchronous>, transform_indices = @transform_2, window_bounds = array<i64: 384, 128>}, {transform_indices = @transform_3, window_bounds = array<i64: 1, 16, 128>}, {transform_indices = @transform_4, window_bounds = array<i64: 1, 2, 128>}]} {
    %cst = arith.constant 0.000000e+00 : f32
    %0 = vector.broadcast %cst : f32 to vector<16x384xf32>
    %c0 = arith.constant 0 : index
    %c0_0 = arith.constant 0 : index
    %1 = vector.load %arg6[%c0, %c0_0] : memref<16x384xf32, #tpu.memory_space<vmem>>, vector<16x384xf32>
    tpu.vector_store %arg6[%c0, %c0_0], %0 {strides = array<i32>} : memref<16x384xf32, #tpu.memory_space<vmem>>, vector<16x384xf32>,
    %c0_1 = arith.constant 0 : index
    %c0_2 = arith.constant 0 : index
    %2 = vector.load %arg2[%c0_1, %c0_2] : memref<2x128xf32, #tpu.memory_space<vmem>>, vector<1x128xf32>
    %c1 = arith.constant 1 : index
    %c0_3 = arith.constant 0 : index
    %3 = vector.load %arg2[%c1, %c0_3] : memref<2x128xf32, #tpu.memory_space<vmem>>, vector<1x128xf32>
    %c0_4 = arith.constant 0 : index
    %c0_5 = arith.constant 0 : index
    %c0_6 = arith.constant 0 : index
    %4 = vector.load %arg1[%c0_4, %c0_5, %c0_6] : memref<1x16x128xbf16, #tpu.memory_space<vmem>>, vector<1x16x128xbf16>
    %5 = vector.shape_cast %4 : vector<1x16x128xbf16> to vector<16x128xbf16>
    %6 = arith.extf %5 : vector<16x128xbf16> to vector<16x128xf32>
    %7 = vector.broadcast %2 : vector<1x128xf32> to vector<16x128xf32>
    %8 = arith.mulf %6, %7 : vector<16x128xf32>
    %9 = vector.broadcast %3 : vector<1x128xf32> to vector<16x128xf32>
    %10 = arith.addf %8, %9 : vector<16x128xf32>
    %cst_7 = arith.constant 0.000000e+00 : f32
    %11 = vector.broadcast %cst_7 : f32 to vector<16x128xf32>
    %12 = arith.maximumf %10, %11 : vector<16x128xf32>
    %13 = vector.extract_strided_slice %12 {offsets = [0, 0], sizes = [15, 128], strides = [1, 1]} : vector<16x128xf32> to vector<15x128xf32>
    %c1_8 = arith.constant 1 : index
    %c0_9 = arith.constant 0 : index
    %14 = vector.load %arg6[%c1_8, %c0_9] : memref<16x384xf32, #tpu.memory_space<vmem>>, vector<15x128xf32>
    tpu.vector_store %arg6[%c1_8, %c0_9], %13 {strides = array<i32>} : memref<16x384xf32, #tpu.memory_space<vmem>>, vector<15x128xf32>,
    %c0_10 = arith.constant 0 : index
    %c128 = arith.constant 128 : index
    %15 = vector.load %arg6[%c0_10, %c128] : memref<16x384xf32, #tpu.memory_space<vmem>>, vector<16x128xf32>
    tpu.vector_store %arg6[%c0_10, %c128], %12 {strides = array<i32>} : memref<16x384xf32, #tpu.memory_space<vmem>>, vector<16x128xf32>,
    %16 = vector.extract_strided_slice %12 {offsets = [1, 0], sizes = [15, 128], strides = [1, 1]} : vector<16x128xf32> to vector<15x128xf32>
    %c0_11 = arith.constant 0 : index
    %c256 = arith.constant 256 : index
    %17 = vector.load %arg6[%c0_11, %c256] : memref<16x384xf32, #tpu.memory_space<vmem>>, vector<15x128xf32>
    tpu.vector_store %arg6[%c0_11, %c256], %16 {strides = array<i32>} : memref<16x384xf32, #tpu.memory_space<vmem>>, vector<15x128xf32>,
    %c0_12 = arith.constant 0 : index
    %c0_13 = arith.constant 0 : index
    %18 = vector.load %arg6[%c0_12, %c0_13] : memref<16x384xf32, #tpu.memory_space<vmem>>, vector<16x384xf32>
    %19 = arith.truncf %18 : vector<16x384xf32> to vector<16x384xbf16>
    %c0_14 = arith.constant 0 : index
    %c0_15 = arith.constant 0 : index
    %20 = vector.load %arg3[%c0_14, %c0_15] : memref<384x128xbf16, #tpu.memory_space<vmem>>, vector<384x128xbf16>
    %cst_16 = arith.constant dense<0.000000e+00> : vector<16x128xf32>
    %21 = tpu.matmul %19, %20, %cst_16 {dimension_numbers = #tpu.dot_dimension_numbers<[1], [0], [0], [1], [0, 0, 1, 1], [], []>} : vector<16x384xbf16>, vector<384x128xbf16>, vector<16x128xf32> -> vector<16x128xf32>
    %22 = vector.shape_cast %21 : vector<16x128xf32> to vector<1x16x128xf32>
    %23 = arith.truncf %22 : vector<1x16x128xf32> to vector<1x16x128xbf16>
    %c0_17 = arith.constant 0 : index
    %c0_18 = arith.constant 0 : index
    %c0_19 = arith.constant 0 : index
    %24 = vector.load %arg4[%c0_17, %c0_18, %c0_19] : memref<1x16x128xbf16, #tpu.memory_space<vmem>>, vector<1x16x128xbf16>
    tpu.vector_store %arg4[%c0_17, %c0_18, %c0_19], %23 {strides = array<i32>} : memref<1x16x128xbf16, #tpu.memory_space<vmem>>, vector<1x16x128xbf16>,
    %cst_20 = arith.constant dense<0.000000e+00> : vector<128xf32>
    %25 = vector.multi_reduction <add>, %21, %cst_20 [0] : vector<16x128xf32> to vector<128xf32>
    %26 = vector.shape_cast %25 : vector<128xf32> to vector<1x128xf32>
    %c0_21 = arith.constant 0 : index
    %c0_22 = arith.constant 0 : index
    %c0_23 = arith.constant 0 : index
    %27 = vector.load %arg5[%c0_21, %c0_22, %c0_23] : memref<1x2x128xf32, #tpu.memory_space<vmem>>, vector<1x1x128xf32>
    %28 = vector.shape_cast %27 : vector<1x1x128xf32> to vector<1x128xf32>
    %29 = vector.shape_cast %26 : vector<1x128xf32> to vector<1x1x128xf32>
    tpu.vector_store %arg5[%c0_21, %c0_22, %c0_23], %29 {strides = array<i32>} : memref<1x2x128xf32, #tpu.memory_space<vmem>>, vector<1x1x128xf32>,
    %30 = arith.mulf %21, %21 : vector<16x128xf32>
    %cst_24 = arith.constant dense<0.000000e+00> : vector<128xf32>
    %31 = vector.multi_reduction <add>, %30, %cst_24 [0] : vector<16x128xf32> to vector<128xf32>
    %32 = vector.shape_cast %31 : vector<128xf32> to vector<1x128xf32>
    %c0_25 = arith.constant 0 : index
    %c1_26 = arith.constant 1 : index
    %c0_27 = arith.constant 0 : index
    %33 = vector.load %arg5[%c0_25, %c1_26, %c0_27] : memref<1x2x128xf32, #tpu.memory_space<vmem>>, vector<1x1x128xf32>
    %34 = vector.shape_cast %33 : vector<1x1x128xf32> to vector<1x128xf32>
    %35 = vector.shape_cast %32 : vector<1x128xf32> to vector<1x1x128xf32>
    tpu.vector_store %arg5[%c0_25, %c1_26, %c0_27], %35 {strides = array<i32>} : memref<1x2x128xf32, #tpu.memory_space<vmem>>, vector<1x1x128xf32>,
    return
  }
  func.func @transform_0(%arg0: i32) -> (i32, i32, i32) {
    %c0_i32 = arith.constant 0 : i32
    %c0_i32_0 = arith.constant 0 : i32
    %c0_i32_1 = arith.constant 0 : i32
    return %arg0, %c0_i32, %c0_i32_0 : i32, i32, i32
  }
  func.func @transform_1(%arg0: i32) -> (i32, i32) {
    %c0_i32 = arith.constant 0 : i32
    %c0_i32_0 = arith.constant 0 : i32
    %c0_i32_1 = arith.constant 0 : i32
    return %c0_i32, %c0_i32_0 : i32, i32
  }
  func.func @transform_2(%arg0: i32) -> (i32, i32) {
    %c0_i32 = arith.constant 0 : i32
    %c0_i32_0 = arith.constant 0 : i32
    %c0_i32_1 = arith.constant 0 : i32
    return %c0_i32, %c0_i32_0 : i32, i32
  }
  func.func @transform_3(%arg0: i32) -> (i32, i32, i32) {
    %c0_i32 = arith.constant 0 : i32
    %c0_i32_0 = arith.constant 0 : i32
    %c0_i32_1 = arith.constant 0 : i32
    return %arg0, %c0_i32, %c0_i32_0 : i32, i32, i32
  }
  func.func @transform_4(%arg0: i32) -> (i32, i32, i32) {
    %c0_i32 = arith.constant 0 : i32
    %c0_i32_0 = arith.constant 0 : i32
    %c0_i32_1 = arith.constant 0 : i32
    return %arg0, %c0_i32, %c0_i32_0 : i32, i32, i32
  }
}

</mosaic_0001>

<bundles_post_ra>
// kernel: tile.27
= control target key start
LH: loop header
LB: loop body
LE: loop exit
PB: predicated region body
PF: predicated region fallthrough
CT: control target
= control target key end

     0   :  { %s28_s0 = inlined_call_operand.vmem [shape: f32[8], index: 0, kind: input, shape index: {}]   ;;  %s29_s1 = inlined_call_operand.vmem [shape: f32[16,8], index: 1, kind: output, shape index: {}]  }
   0x1   :  { %v4_v0 = vld [vmem:[%s28_s0] ss:$0 sm:$0xff] }
   0x2   :  { %5 = vst [vmem:[%s29_s1] sm:$0xff] %v4_v0  ;;  %8 = vst [vmem:[%s29_s1 + $0x8] sm:$0xff] %v4_v0 }

// kernel: tile.29
= control target key start
LH: loop header
LB: loop body
LE: loop exit
PB: predicated region body
PF: predicated region fallthrough
CT: control target
= control target key end

     0   :  { %s131_s10 = smov 120   ;;  %s132_s11 = smov 104   ;;  %vm3_vm0 = vcmask 64512   ;;  %vm9_vm1 = vcmask 1048512   ;;  %vm15_vm2 = vcmask 982912   ;;  %vm21_vm3 = vcmask 917312   ;;  %s207_s0 = inlined_call_operand.vmem [shape: f32[16,8], index: 0, kind: input, shape index: {}]   ;;  %s208_s1 = inlined_call_operand.vmem [shape: f32[1,128], index: 1, kind: output, shape index: {}]  }
   0x1   :  { %v101_v0 = vld [vmem:[%s207_s0 + $0xf] sm:$0x1]   ;;  %v103_v1 = vld [vmem:[%s207_s0 + $0xd] sm:$0x1]   ;;  %v102_v2 = vld [vmem:[%s207_s0 + $0xe] sm:$0x1]  }
   0x2   :  { %7 = vrot.lane.b32.xlu0 %v101_v0, %s131_s10  ;;  %19 = vrot.lane.b32.xlu1 %v103_v1, %s132_s11  ;;  %v104_v3 = vld [vmem:[%s207_s0 + $0xc] sm:$0x1]   ;;  %s133_s16 = smov 112   ;;  %s134_s17 = smov 96   ;;  %v105_v4 = vld [vmem:[%s207_s0 + $0xb] sm:$0x1]  }
   0x3   :  { %v106_v5 = vld [vmem:[%s207_s0 + $0xa] sm:$0x1]   ;;  %v2_v6 = vld [vmem:[%s207_s0] sm:$0x1]   ;;  %s135_s24 = smov 88   ;;  %s136_s25 = smov 80  }
   0x4   :  { %4 = vst.msk [vmem:[#allocation0] sm:$0x1] %vm3_vm0, %v2_v6   ;;  %v107_v7 = vld [vmem:[%s207_s0 + $0x9] sm:$0x1]   ;;  %v108_v8 = vld [vmem:[%s207_s0 + $0x8] sm:$0x1]  }
   0x5   :  { %s137_s30 = smov 72   ;;  %s138_s2 = smov 64   ;;  %v109_v9 = vld [vmem:[%s207_s0 + $0x7] sm:$0x1]   ;;  %v110_v10 = vld [vmem:[%s207_s0 + $0x6] sm:$0x1]  }
   0x6   :  { %13 = vrot.lane.b32.xlu0 %v102_v2, %s133_s16  ;;  %25 = vrot.lane.b32.xlu1 %v104_v3, %s134_s17  ;;  %s139_s7 = smov 56   ;;  %s140_s8 = smov 48   ;;  %v111_v11 = vld [vmem:[%s207_s0 + $0x5] sm:$0x1]   ;;  %v112_v12 = vld [vmem:[%s207_s0 + $0x4] sm:$0x1]  }
   0x7   :  { %s141_s13 = smov 40   ;;  %s142_s14 = smov 32   ;;  %v113_v13 = vld [vmem:[%s207_s0 + $0x3] sm:$0x1]   ;;  %v114_v14 = vld [vmem:[%s207_s0 + $0x2] sm:$0x1]  }
   0x8   :  { %s143_s19 = smov 24   ;;  %s144_s20 = smov 16   ;;  %v115_v15 = vld [vmem:[%s207_s0 + $0x1] sm:$0x1]   ;;  %vm27_vm4 = vcmask 851712   ;;  %vm33_vm5 = vcmask 786112  }
   0x9   :  { %s145_s0 = smov 8   ;;  %vm39_vm6 = vcmask 720512   ;;  %vm45_vm7 = vcmask 654912   ;;  %vm51_vm8 = vcmask 589312   ;;  %vm57_vm9 = vcmask 523712  }
   0xa   :  { %31 = vrot.lane.b32.xlu0 %v105_v4, %s135_s24  ;;  %37 = vrot.lane.b32.xlu1 %v106_v5, %s136_s25  ;;  %vm63_vm10 = vcmask 458112   ;;  %vm69_vm11 = vcmask 392512   ;;  %vm75_vm12 = vcmask 326912   ;;  %vm81_vm13 = vcmask 261312  }
   0xb   :  { %vm87_vm14 = vcmask 195712   ;;  %vm93_vm15 = vcmask 130112  }
   0xe   :  { %43 = vrot.lane.b32.xlu0 %v107_v7, %s137_s30  ;;  %49 = vrot.lane.b32.xlu1 %v108_v8, %s138_s2 }
  0x12   :  { %55 = vrot.lane.b32.xlu0 %v109_v9, %s139_s7  ;;  %61 = vrot.lane.b32.xlu1 %v110_v10, %s140_s8 }
  0x16   :  { %67 = vrot.lane.b32.xlu0 %v111_v11, %s141_s13  ;;  %73 = vrot.lane.b32.xlu1 %v112_v12, %s142_s14 }
  0x1a   :  { %79 = vrot.lane.b32.xlu0 %v113_v13, %s143_s19  ;;  %85 = vrot.lane.b32.xlu1 %v114_v14, %s144_s20 }
  0x1e   :  { %91 = vrot.lane.b32.xlu0 %v115_v15, %s145_s0 }
  0x74   :  { %v8_v16 = vpop.permute.xlu0 %7   ;;  %v20_v17 = vpop.permute.xlu1 %19  }
  0x75   :  { %10 = vst.msk [vmem:[#allocation0] sm:$0x1] %vm9_vm1, %v8_v16  }
  0x78   :  { %v14_v18 = vpop.permute.xlu0 %13   ;;  %v26_v19 = vpop.permute.xlu1 %25  }
  0x79   :  { %16 = vst.msk [vmem:[#allocation0] sm:$0x1] %vm15_vm2, %v14_v18  }
  0x7a   :  { %22 = vst.msk [vmem:[#allocation0] sm:$0x1] %vm21_vm3, %v20_v17  }
  0x7b   :  { %28 = vst.msk [vmem:[#allocation0] sm:$0x1] %vm27_vm4, %v26_v19  }
  0x7c   :  { %v32_v20 = vpop.permute.xlu0 %31   ;;  %v38_v21 = vpop.permute.xlu1 %37  }
  0x7d   :  { %34 = vst.msk [vmem:[#allocation0] sm:$0x1] %vm33_vm5, %v32_v20  }
  0x7e   :  { %40 = vst.msk [vmem:[#allocation0] sm:$0x1] %vm39_vm6, %v38_v21  }
  0x80   :  { %v44_v22 = vpop.permute.xlu0 %43   ;;  %v50_v23 = vpop.permute.xlu1 %49  }
  0x81   :  { %46 = vst.msk [vmem:[#allocation0] sm:$0x1] %vm45_vm7, %v44_v22  }
  0x82   :  { %52 = vst.msk [vmem:[#allocation0] sm:$0x1] %vm51_vm8, %v50_v23  }
  0x84   :  { %v56_v24 = vpop.permute.xlu0 %55   ;;  %v62_v25 = vpop.permute.xlu1 %61  }
  0x85   :  { %58 = vst.msk [vmem:[#allocation0] sm:$0x1] %vm57_vm9, %v56_v24  }
  0x86   :  { %64 = vst.msk [vmem:[#allocation0] sm:$0x1] %vm63_vm10, %v62_v25  }
  0x88   :  { %v68_v26 = vpop.permute.xlu0 %67   ;;  %v74_v27 = vpop.permute.xlu1 %73  }
  0x89   :  { %70 = vst.msk [vmem:[#allocation0] sm:$0x1] %vm69_vm11, %v68_v26  }
  0x8a   :  { %76 = vst.msk [vmem:[#allocation0] sm:$0x1] %vm75_vm12, %v74_v27  }
  0x8c   :  { %v80_v28 = vpop.permute.xlu0 %79   ;;  %v86_v29 = vpop.permute.xlu1 %85  }
  0x8d   :  { %82 = vst.msk [vmem:[#allocation0] sm:$0x1] %vm81_vm13, %v80_v28  }
  0x8e   :  { %88 = vst.msk [vmem:[#allocation0] sm:$0x1] %vm87_vm14, %v86_v29  }
  0x90   :  { %v92_v30 = vpop.permute.xlu0 %91  }
  0x91   :  { %94 = vst.msk [vmem:[#allocation0] sm:$0x1] %vm93_vm15, %v92_v30  }
  0x98   :  { %v98_v31 = vld [vmem:[#allocation0] sm:$0x1] }
  0x99   :  { %100 = vst [vmem:[%s208_s1] sm:$0x1] %v98_v31 }

// kernel: conv_block_forward.3
= control target key start
LH: loop header
LB: loop body
LE: loop exit
PB: predicated region body
PF: predicated region fallthrough
CT: control target
= control target key end

     0   :  { %s779_s12 = smov 0   ;;  %s906_s0 = inlined_call_operand.vmem [shape: bf16[2,16,64], index: 0, kind: input, shape index: {}]   ;;  %s907_s1 = inlined_call_operand.vmem [shape: bf16[384,128], index: 1, kind: input, shape index: {}]   ;;  %s908_s2 = inlined_call_operand.vmem [shape: bf16[2,16,128], index: 2, kind: output, shape index: {0}]   ;;  %s909_s3 = inlined_call_operand.vmem [shape: f32[2,2,128], index: 3, kind: output, shape index: {1}]  }
   0x1 LB: > { %s613_s13 = sadd.s32 4294967295, %s755_s12   ;;  %p617_p0 = scmp.ge.s32.totalorder %s755_s12, 1  ;;  %s755_s12 = sphi %s779_s12, %s14_s12  }
   0x2   : > { %p140_p1 = scmp.lt.s32.totalorder %s755_s12, 3 }
   0x4   : > { %p141_p2 = pnand %p617_p0, %p140_p1 }
   0x5   : > { %v725_v0 = vld [vmem:[%s907_s1 + $0x40] sm:$0xff] (!%p141_p2)   ;;  %v757_v1 = vmov (!%p141_p2), 0.0   ;;  %v728_v4 = vld [vmem:[%s907_s1 + $0x48] sm:$0xff] (!%p141_p2)   ;;  %v731_v7 = vld [vmem:[%s907_s1 + $0x50] sm:$0xff] (!%p141_p2)   ;;  %vm758_vm0 = vmmov (!%p141_p2), 0   ;;  %p168_p3 = scmp.lt.s32.totalorder (!%p141_p2), %s613_s13, 1 }
   0x6   : > { %144 = sbr.rel (%p141_p2) target bundleno = 274 (0x112), region = 28  ;;  %695 = vmatprep.subr.bf16.mxu1 (!%p141_p2), %v757_v1  ;;  %183 = vst [vmem:[#allocation2] sm:$0xff] (!%p141_p2), %v757_v1  ;;  %184 = vst [vmem:[#allocation2 + $0x8] sm:$0xff] (!%p141_p2), %v757_v1  ;;  %v726_v2 = vld [vmem:[%s907_s1] sm:$0xff] (!%p141_p2)   ;;  %664 = vmatprep.subr.bf16.mxu0 (!%p141_p2), %v725_v0  ;;  %v729_v5 = vld [vmem:[%s907_s1 + $0x8] sm:$0xff] (!%p141_p2)   ;;  %vm203_vm1 = vcmask (!%p141_p2), 523264  }
   0x7   : > { %185 = vst [vmem:[#allocation2 + $0x10] sm:$0xff] (!%p141_p2), %v757_v1  ;;  %186 = vst [vmem:[#allocation2 + $0x18] sm:$0xff] (!%p141_p2), %v757_v1  ;;  %v727_v3 = vld [vmem:[%s907_s1 + $0x80] sm:$0xff] (!%p141_p2)   ;;  %665 = vmatpush3.bf16.msra.mxu0 (!%p141_p2), %v726_v2  ;;  %v730_v6 = vld [vmem:[%s907_s1 + $0x88] sm:$0xff] (!%p141_p2)   ;;  %711 = vmatprep.mubr.msk.bf16.mxu1 (!%p141_p2), %vm758_vm0, %v757_v1  ;;  %vm195_vm2 = vcmask (!%p141_p2), 1040384   ;;  %vm201_vm3 = vcmask (!%p141_p2), 523265  }
   0x8   : > { %187 = vst [vmem:[#allocation2 + $0x20] sm:$0xff] (!%p141_p2), %v757_v1  ;;  %188 = vst [vmem:[#allocation2 + $0x28] sm:$0xff] (!%p141_p2), %v757_v1  ;;  %696 = vmatpush3.bf16.msra.mxu1 (!%p141_p2), %v727_v3  ;;  %666 = vmatprep.subr.bf16.mxu0 (!%p141_p2), %v728_v4  ;;  %v732_v8 = vld [vmem:[%s907_s1 + $0x10] sm:$0xff] (!%p141_p2)   ;;  %v734_v10 = vld [vmem:[%s907_s1 + $0x58] sm:$0xff] (!%p141_p2)   ;;  %vm207_vm4 = vcmask (!%p141_p2), 1046528   ;;  %vm214_vm5 = vcmask (!%p141_p2), 522240  }
   0x9   : > { %697 = vmatprep.subr.bf16.mxu1 (!%p141_p2), %v757_v1  ;;  %v733_v9 = vld [vmem:[%s907_s1 + $0x90] sm:$0xff] (!%p141_p2)   ;;  %v735_v11 = vld [vmem:[%s907_s1 + $0x18] sm:$0xff] (!%p141_p2)   ;;  %v737_v13 = vld [vmem:[%s907_s1 + $0x60] sm:$0xff] (!%p141_p2)  }
   0xa   : > { %v736_v12 = vld [vmem:[%s907_s1 + $0x98] sm:$0xff] (!%p141_p2)   ;;  %v738_v14 = vld [vmem:[%s907_s1 + $0x20] sm:$0xff] (!%p141_p2)   ;;  %v740_v16 = vld [vmem:[%s907_s1 + $0x68] sm:$0xff] (!%p141_p2)  }
   0xb   : > { %667 = vmatpush3.bf16.msra.mxu0 (!%p141_p2), %v729_v5  ;;  %v739_v15 = vld [vmem:[%s907_s1 + $0xa0] sm:$0xff] (!%p141_p2)   ;;  %v741_v17 = vld [vmem:[%s907_s1 + $0x28] sm:$0xff] (!%p141_p2)   ;;  %v743_v19 = vld [vmem:[%s907_s1 + $0x70] sm:$0xff] (!%p141_p2)  }
   0xc   : > { %698 = vmatpush3.bf16.msra.mxu1 (!%p141_p2), %v730_v6  ;;  %668 = vmatprep.subr.bf16.mxu0 (!%p141_p2), %v731_v7  ;;  %v742_v18 = vld [vmem:[%s907_s1 + $0xa8] sm:$0xff] (!%p141_p2)   ;;  %v744_v20 = vld [vmem:[%s907_s1 + $0x30] sm:$0xff] (!%p141_p2)   ;;  %v746_v22 = vld [vmem:[%s907_s1 + $0x78] sm:$0xff] (!%p141_p2)  }
   0xd   : > { %699 = vmatprep.subr.bf16.mxu1 %v757_v1  ;;  %s911_s13 = smov (!%p168_p3, %s613_s13), 1  ;;  %v745_v21 = vld [vmem:[%s907_s1 + $0xb0] sm:$0xff]   ;;  %v747_v26 = vld [vmem:[%s907_s1 + $0x38] sm:$0xff]  }
   0xe   : > { %s651_s23 = sshll.u32 %s911_s13, 3  ;;  %v748_v31 = vld [vmem:[%s907_s1 + $0xb8] sm:$0xff]   ;;  %s622_s19 = sshll.u32 %s911_s13, 1 }
   0xf   : > { %669 = vmatpush3.bf16.msra.mxu0 %v732_v8  ;;  %s172_s30 = scalar_lea.vmem %s906_s0, %s651_s23  ;;  %s177_s18 = scalar_lea.vmem %s908_s2, %s651_s23 }
  0x10   : > { %700 = vmatpush3.bf16.msra.mxu1 %v733_v9  ;;  %670 = vmatprep.subr.bf16.mxu0 %v734_v10  ;;  %v656_v23 = vld [vmem:[%s172_s30] sm:$0xff]   ;;  %s181_s22 = scalar_lea.vmem %s909_s3, %s622_s19 }
  0x11   : > { %701 = vmatprep.subr.bf16.mxu1 %v757_v1  ;;  %v657_v24 = vunpack.c.l.bf16 %v656_v23  ;;  %v658_v25 = vunpack.c.h.bf16 %v656_v23 }
  0x13   : > { %671 = vmatpush3.bf16.msra.mxu0 %v735_v11  ;;  %v197_v27 = vrot.slane %v658_v25, 7  ;;  %205 = vst.msk [vmem:[#allocation2 + $0x8] sm:$0xff] %vm203_vm1, %v657_v24  ;;  %206 = vst.msk [vmem:[#allocation2 + $0x20] sm:$0xff] %vm203_vm1, %v658_v25  ;;  %v208_v28 = vrot.slane %v657_v24, 1  ;;  %v196_v29 = vrot.slane %v657_v24, 7  ;;  %v209_v30 = vrot.slane %v658_v25, 1 }
  0x14   : > { %702 = vmatpush3.bf16.msra.mxu1 %v736_v12  ;;  %672 = vmatprep.subr.bf16.mxu0 %v737_v13 }
  0x15   : > { %703 = vmatprep.subr.bf16.mxu1 %v757_v1  ;;  %v198_v32 = vsel %vm195_vm2, %v196_v29, %v197_v27  ;;  %202 = vst.msk [vmem:[#allocation2] sm:$0xfe] %vm201_vm3, %v196_v29  ;;  %v210_v33 = vsel %vm207_vm4, %v208_v28, %v209_v30 }
  0x16   : > { %215 = vst.msk [vmem:[#allocation2 + $0x28] sm:$0x7f] %vm214_vm5, %v209_v30 }
  0x17   : > { %673 = vmatpush3.bf16.msra.mxu0 %v738_v14  ;;  %204 = vst.msk [vmem:[#allocation2 + $0x18] sm:$0xff] %vm203_vm1, %v198_v32  ;;  %213 = vst.msk [vmem:[#allocation2 + $0x10] sm:$0xff] %vm203_vm1, %v210_v33 }
  0x18   : > { %704 = vmatpush3.bf16.msra.mxu1 %v739_v15  ;;  %674 = vmatprep.subr.bf16.mxu0 %v740_v16 }
  0x19   : > { %705 = vmatprep.subr.bf16.mxu1 %v757_v1 }
  0x1a   : > { %v217_v34 = vld [vmem:[#allocation2 + $0x8] sm:$0xff]  ;;  %v220_v35 = vld [vmem:[#allocation2 + $0x20] sm:$0xff] }
  0x1b   : > { %675 = vmatpush3.bf16.msra.mxu0 %v741_v17  ;;  %v223_v36 = vpack.c.bf16 %v220_v35, %v217_v34 }
  0x1c   : > { %706 = vmatpush3.bf16.msra.mxu1 %v742_v18  ;;  %676 = vmatprep.subr.bf16.mxu0 %v743_v19  ;;  %v216_v37 = vld [vmem:[#allocation2] sm:$0xff] }
  0x1d   : > { %707 = vmatprep.subr.bf16.mxu1 %v757_v1  ;;  %v221_v38 = vld [vmem:[#allocation2 + $0x28] sm:$0xff]  ;;  %449 = vmatprep.mubr.bf16.mxu0 %v223_v36 }
  0x1e   : > { %v219_v39 = vld [vmem:[#allocation2 + $0x18] sm:$0xff]  ;;  %v218_v40 = vld [vmem:[#allocation2 + $0x10] sm:$0xff] }
  0x1f   : > { %677 = vmatpush3.bf16.msra.mxu0 %v744_v20  ;;  %v222_v41 = vpack.c.bf16 %v219_v39, %v216_v37  ;;  %v224_v42 = vpack.c.bf16 %v221_v38, %v218_v40 }
  0x20   : > { %708 = vmatpush3.bf16.msra.mxu1 %v745_v21  ;;  %678 = vmatprep.subr.bf16.mxu0 %v746_v22 }
  0x21   : > { %709 = vmatprep.subr.bf16.mxu1 %v757_v1 }
  0x23   : > { %679 = vmatpush3.bf16.msra.mxu0 %v747_v26 }
  0x24   : > { %710 = vmatpush3.bf16.msra.mxu1 %v748_v31 }
  0x26   : > { %450 = vmatmul.mubr.bf16.vlgmr.msra.gmra.mrb[0].mxu0 %v222_v41 }
  0x27   : > { %712 = vmatmul.mubr.bf16.vlgmr.msra.gmra.mrb[0].mxu1 %v224_v42 }
  0xf9   : > { %v680_v43 = vpop.f32.mrb[0].mxu0 }
  0xfa   : > { %v492_v44 = vpop.f32.mrb[0].mxu1  ;;  %v681_v45 = vpop.f32.mrb[1].mxu0 }
  0xfb   : > { %v713_v46 = vpop.f32.mrb[1].mxu1  ;;  %v682_v47 = vadd.f32 %v681_v45, %v680_v43  ;;  %v683_v48 = vpop.f32.mrb[2].mxu0 }
  0xfc   : > { %v495_v49 = vpop.f32.mrb[2].mxu1  ;;  %v684_v50 = vpop.f32.mrb[3].mxu0 }
  0xfd   : > { %v714_v51 = vpop.f32.mrb[3].mxu1  ;;  %v493_v52 = vadd.f32 %v682_v47, %v492_v44  ;;  %v685_v53 = vadd.f32 %v684_v50, %v683_v48 }
  0xff   : > { %v496_v54 = vadd.f32 %v685_v53, %v495_v49  ;;  %v517_v55 = vmul.f32 %v493_v52, %v493_v52 }
 0x101   : > { %v662_v56 = vpack.c.bf16 %v496_v54, %v493_v52  ;;  %v509_v57 = vadd.f32 %v496_v54, %v493_v52  ;;  %v518_v58 = vmul.f32 %v496_v54, %v496_v54 }
 0x103   : > { %663 = vst [vmem:[%s177_s18] sm:$0xff] %v662_v56   ;;  %v510_v59 = vrot.slane %v509_v57, 4  ;;  %v519_v60 = vadd.f32 %v518_v58, %v517_v55 }
 0x105   : > { %v511_v61 = vadd.f32 %v510_v59, %v509_v57  ;;  %v520_v62 = vrot.slane %v519_v60, 4 }
 0x107   : > { %v512_v63 = vrot.slane %v511_v61, 2  ;;  %v521_v0 = vadd.f32 %v520_v62, %v519_v60 }
 0x109   : > { %v513_v1 = vadd.f32 %v512_v63, %v511_v61  ;;  %v522_v2 = vrot.slane %v521_v0, 2 }
 0x10b   : > { %v514_v3 = vrot.slane %v513_v1, 1  ;;  %v523_v4 = vadd.f32 %v522_v2, %v521_v0 }
 0x10d   : > { %v515_v5 = vadd.f32 %v514_v3, %v513_v1  ;;  %v524_v6 = vrot.slane %v523_v4, 1 }
 0x10f   : > { %516 = vst [vmem:[%s181_s22] sm:$0x1] %v515_v5  ;;  %v525_v7 = vadd.f32 %v524_v6, %v523_v4 }
 0x111   : > { %526 = vst [vmem:[%s181_s22 + $0x1] sm:$0x1] %v525_v7 }
 0x112 PF: > { %s14_s12 = sadd.s32 1, %s755_s12  }
 0x113   : > { %p11_p4 = scmp.ge.s32.totalorder %s14_s12, 4  }
 0x115   :  { %13 = sbr.rel (!%p11_p4) target bundleno = 1 (0x1), region = 70 }

// kernel: conv_block_forward.5
= control target key start
LH: loop header
LB: loop body
LE: loop exit
PB: predicated region body
PF: predicated region fallthrough
CT: control target
= control target key end

     0   :  { %s99_s0 = inlined_call_operand.vmem [shape: bf16[32,128], index: 0, kind: input, shape index: {}]   ;;  %s100_s1 = inlined_call_operand.vmem [shape: f32[2,128], index: 1, kind: input, shape index: {}]   ;;  %s101_s2 = inlined_call_operand.vmem [shape: f32[32,128], index: 2, kind: output, shape index: {}]  }
   0x1   :  { %v52_v0 = vld [vmem:[%s99_s0] sm:$0xff]   ;;  %v59_v4 = vld [vmem:[%s99_s0 + $0x8] sm:$0xff]  }
   0x2   :  { %v49_v1 = vld [vmem:[%s100_s1] ss:$0 sm:$0xff]  ;;  %v53_v2 = vunpack.c.l.bf16 %v52_v0  ;;  %v54_v3 = vunpack.c.h.bf16 %v52_v0  ;;  %v50_v5 = vld [vmem:[%s100_s1 + $0x1] ss:$0 sm:$0xff]  ;;  %v57_v6 = vunpack.c.l.bf16 %v59_v4  ;;  %v58_v7 = vunpack.c.h.bf16 %v59_v4 }
   0x4   :  { %v24_v8 = vmul.f32 %v53_v2, %v49_v1  ;;  %v25_v9 = vmul.f32 %v54_v3, %v49_v1  ;;  %v26_v10 = vmul.f32 %v57_v6, %v49_v1  ;;  %v27_v11 = vmul.f32 %v58_v7, %v49_v1 }
   0x6   :  { %v33_v12 = vadd.f32 %v50_v5, %v24_v8  ;;  %v34_v13 = vadd.f32 %v50_v5, %v25_v9  ;;  %v35_v14 = vadd.f32 %v50_v5, %v26_v10  ;;  %v36_v15 = vadd.f32 %v50_v5, %v27_v11 }
   0x8   :  { %v37_v16 = vmax.f32 %v33_v12, 0.0  ;;  %v38_v17 = vmax.f32 %v34_v13, 0.0  ;;  %v39_v18 = vmax.f32 %v35_v14, 0.0  ;;  %v40_v19 = vmax.f32 %v36_v15, 0.0 }
   0xa   :  { %41 = vst [vmem:[%s101_s2] sm:$0xff] %v37_v16  ;;  %42 = vst [vmem:[%s101_s2 + $0x8] sm:$0xff] %v38_v17 }
   0xb   :  { %43 = vst [vmem:[%s101_s2 + $0x10] sm:$0xff] %v39_v18  ;;  %44 = vst [vmem:[%s101_s2 + $0x18] sm:$0xff] %v40_v19 }

// kernel: conv_block_forward.4
= control target key start
LH: loop header
LB: loop body
LE: loop exit
PB: predicated region body
PF: predicated region fallthrough
CT: control target
= control target key end

     0   :  { %s826_s15 = smov 0   ;;  %s947_s0 = inlined_call_operand.vmem [shape: bf16[2,16,128], index: 0, kind: input, shape index: {}]   ;;  %s948_s1 = inlined_call_operand.vmem [shape: f32[2,128], index: 1, kind: input, shape index: {}]   ;;  %s949_s2 = inlined_call_operand.vmem [shape: bf16[384,128], index: 2, kind: input, shape index: {}]   ;;  %s950_s3 = inlined_call_operand.vmem [shape: bf16[2,16,128], index: 3, kind: output, shape index: {0}]   ;;  %s951_s4 = inlined_call_operand.vmem [shape: f32[2,2,128], index: 4, kind: output, shape index: {1}]  }
   0x1 LB: > { %s653_s16 = sadd.s32 4294967295, %s797_s15   ;;  %p657_p0 = scmp.ge.s32.totalorder %s797_s15, 1  ;;  %s797_s15 = sphi %s826_s15, %s15_s15  }
   0x2   : > { %p165_p1 = scmp.lt.s32.totalorder %s797_s15, 3 }
   0x4   : > { %p166_p2 = pnand %p657_p0, %p165_p1 }
   0x5   : > { %v767_v0 = vld [vmem:[%s949_s2 + $0x40] sm:$0xff] (!%p166_p2)   ;;  %v799_v1 = vmov (!%p166_p2), 0.0   ;;  %v770_v4 = vld [vmem:[%s949_s2 + $0x48] sm:$0xff] (!%p166_p2)   ;;  %vm800_vm0 = vmmov (!%p166_p2), 0   ;;  %v773_v7 = vld [vmem:[%s949_s2 + $0x50] sm:$0xff] (!%p166_p2)   ;;  %p195_p3 = scmp.lt.s32.totalorder (!%p166_p2), %s653_s16, 1 }
   0x6   : > { %169 = sbr.rel (%p166_p2) target bundleno = 274 (0x112), region = 32  ;;  %737 = vmatprep.subr.bf16.mxu1 (!%p166_p2), %v799_v1  ;;  %210 = vst [vmem:[#allocation2] sm:$0xff] (!%p166_p2), %v799_v1  ;;  %215 = vst [vmem:[#allocation2 + $0x28] sm:$0xff] (!%p166_p2), %v799_v1  ;;  %v768_v2 = vld [vmem:[%s949_s2] sm:$0xff] (!%p166_p2)   ;;  %706 = vmatprep.subr.bf16.mxu0 (!%p166_p2), %v767_v0  ;;  %v771_v5 = vld [vmem:[%s949_s2 + $0x8] sm:$0xff] (!%p166_p2)   ;;  %vm238_vm1 = vcmask (!%p166_p2), 1040384  }
   0x7   : > { %v769_v3 = vld [vmem:[%s949_s2 + $0x80] sm:$0xff] (!%p166_p2)   ;;  %707 = vmatpush3.bf16.msra.mxu0 (!%p166_p2), %v768_v2  ;;  %753 = vmatprep.mubr.msk.bf16.mxu1 (!%p166_p2), %vm800_vm0, %v799_v1  ;;  %v772_v6 = vld [vmem:[%s949_s2 + $0x88] sm:$0xff] (!%p166_p2)   ;;  %v774_v8 = vld [vmem:[%s949_s2 + $0x10] sm:$0xff] (!%p166_p2)   ;;  %vm248_vm2 = vcmask (!%p166_p2), 1046528  }
   0x8   : > { %738 = vmatpush3.bf16.msra.mxu1 (!%p166_p2), %v769_v3  ;;  %708 = vmatprep.subr.bf16.mxu0 (!%p166_p2), %v770_v4  ;;  %v775_v9 = vld [vmem:[%s949_s2 + $0x90] sm:$0xff] (!%p166_p2)   ;;  %v776_v10 = vld [vmem:[%s949_s2 + $0x58] sm:$0xff] (!%p166_p2)   ;;  %v779_v13 = vld [vmem:[%s949_s2 + $0x60] sm:$0xff] (!%p166_p2)  }
   0x9   : > { %739 = vmatprep.subr.bf16.mxu1 (!%p166_p2), %v799_v1  ;;  %v777_v11 = vld [vmem:[%s949_s2 + $0x18] sm:$0xff] (!%p166_p2)   ;;  %v780_v14 = vld [vmem:[%s949_s2 + $0x20] sm:$0xff] (!%p166_p2)   ;;  %v782_v16 = vld [vmem:[%s949_s2 + $0x68] sm:$0xff] (!%p166_p2)  }
   0xa   : > { %v778_v12 = vld [vmem:[%s949_s2 + $0x98] sm:$0xff] (!%p166_p2)   ;;  %v781_v15 = vld [vmem:[%s949_s2 + $0xa0] sm:$0xff] (!%p166_p2)   ;;  %v783_v17 = vld [vmem:[%s949_s2 + $0x28] sm:$0xff] (!%p166_p2)  }
   0xb   : > { %709 = vmatpush3.bf16.msra.mxu0 (!%p166_p2), %v771_v5  ;;  %v784_v18 = vld [vmem:[%s949_s2 + $0xa8] sm:$0xff] (!%p166_p2)   ;;  %v785_v19 = vld [vmem:[%s949_s2 + $0x70] sm:$0xff] (!%p166_p2)   ;;  %v788_v22 = vld [vmem:[%s949_s2 + $0x78] sm:$0xff] (!%p166_p2)  }
   0xc   : > { %740 = vmatpush3.bf16.msra.mxu1 (!%p166_p2), %v772_v6  ;;  %710 = vmatprep.subr.bf16.mxu0 (!%p166_p2), %v773_v7  ;;  %v786_v20 = vld [vmem:[%s949_s2 + $0x30] sm:$0xff] (!%p166_p2)   ;;  %v663_v23 = vld [vmem:[%s948_s1] ss:$0 sm:$0xff] (!%p166_p2)  ;;  %v664_v27 = vld [vmem:[%s948_s1 + $0x1] ss:$0 sm:$0xff] (!%p166_p2) }
   0xd   : > { %741 = vmatprep.subr.bf16.mxu1 %v799_v1  ;;  %s953_s16 = smov (!%p195_p3, %s653_s16), 1  ;;  %v787_v21 = vld [vmem:[%s949_s2 + $0xb0] sm:$0xff]   ;;  %v789_v28 = vld [vmem:[%s949_s2 + $0x38] sm:$0xff]  }
   0xe   : > { %s693_s27 = sshll.u32 %s953_s16, 3  ;;  %v790_v31 = vld [vmem:[%s949_s2 + $0xb8] sm:$0xff]   ;;  %s662_s29 = sshll.u32 %s953_s16, 1 }
   0xf   : > { %711 = vmatpush3.bf16.msra.mxu0 %v774_v8  ;;  %s199_s8 = scalar_lea.vmem %s947_s0, %s693_s27  ;;  %s204_s28 = scalar_lea.vmem %s950_s3, %s693_s27 }
  0x10   : > { %742 = vmatpush3.bf16.msra.mxu1 %v775_v9  ;;  %712 = vmatprep.subr.bf16.mxu0 %v776_v10  ;;  %v698_v24 = vld [vmem:[%s199_s8] sm:$0xff]   ;;  %s208_s27 = scalar_lea.vmem %s951_s4, %s662_s29 }
  0x11   : > { %743 = vmatprep.subr.bf16.mxu1 %v799_v1  ;;  %v699_v25 = vunpack.c.l.bf16 %v698_v24  ;;  %v700_v26 = vunpack.c.h.bf16 %v698_v24 }
  0x13   : > { %713 = vmatpush3.bf16.msra.mxu0 %v777_v11  ;;  %v226_v29 = vmul.f32 %v699_v25, %v663_v23  ;;  %v227_v30 = vmul.f32 %v700_v26, %v663_v23 }
  0x14   : > { %744 = vmatpush3.bf16.msra.mxu1 %v778_v12  ;;  %714 = vmatprep.subr.bf16.mxu0 %v779_v13 }
  0x15   : > { %745 = vmatprep.subr.bf16.mxu1 %v799_v1  ;;  %v232_v32 = vadd.f32 %v664_v27, %v226_v29  ;;  %v233_v33 = vadd.f32 %v664_v27, %v227_v30 }
  0x17   : > { %715 = vmatpush3.bf16.msra.mxu0 %v780_v14  ;;  %v234_v34 = vmax.f32 %v232_v32, 0.0  ;;  %v235_v35 = vmax.f32 %v233_v33, 0.0 }
  0x18   : > { %746 = vmatpush3.bf16.msra.mxu1 %v781_v15  ;;  %716 = vmatprep.subr.bf16.mxu0 %v782_v16 }
  0x19   : > { %747 = vmatprep.subr.bf16.mxu1 %v799_v1  ;;  %v240_v36 = vrot.slane %v235_v35, 7  ;;  %v249_v37 = vrot.slane %v234_v34, 1  ;;  %v263_v38 = vpack.c.bf16 %v235_v35, %v234_v34  ;;  %v239_v39 = vrot.slane %v234_v34, 7 }
  0x1a   : > { %v250_v40 = vrot.slane %v235_v35, 1 }
  0x1b   : > { %717 = vmatpush3.bf16.msra.mxu0 %v783_v17  ;;  %489 = vmatprep.mubr.bf16.mxu0 %v263_v38  ;;  %v241_v41 = vsel %vm238_vm1, %v239_v39, %v240_v36  ;;  %244 = vst [vmem:[#allocation2] sm:$0xfe] %v239_v39 }
  0x1c   : > { %748 = vmatpush3.bf16.msra.mxu1 %v784_v18  ;;  %718 = vmatprep.subr.bf16.mxu0 %v785_v19  ;;  %v251_v42 = vsel %vm248_vm2, %v249_v37, %v250_v40  ;;  %255 = vst [vmem:[#allocation2 + $0x28] sm:$0x7f] %v250_v40 }
  0x1d   : > { %749 = vmatprep.subr.bf16.mxu1 %v799_v1 }
  0x1f   : > { %719 = vmatpush3.bf16.msra.mxu0 %v786_v20 }
  0x20   : > { %750 = vmatpush3.bf16.msra.mxu1 %v787_v21  ;;  %720 = vmatprep.subr.bf16.mxu0 %v788_v22 }
  0x21   : > { %751 = vmatprep.subr.bf16.mxu1 %v799_v1 }
  0x22   : > { %v256_v43 = vld [vmem:[#allocation2] sm:$0xff] }
  0x23   : > { %721 = vmatpush3.bf16.msra.mxu0 %v789_v28  ;;  %v262_v44 = vpack.c.bf16 %v241_v41, %v256_v43  ;;  %v261_v45 = vld [vmem:[#allocation2 + $0x28] sm:$0xff] }
  0x24   : > { %752 = vmatpush3.bf16.msra.mxu1 %v790_v31  ;;  %v264_v46 = vpack.c.bf16 %v261_v45, %v251_v42 }
  0x26   : > { %490 = vmatmul.mubr.bf16.vlgmr.msra.gmra.mrb[0].mxu0 %v262_v44 }
  0x27   : > { %754 = vmatmul.mubr.bf16.vlgmr.msra.gmra.mrb[0].mxu1 %v264_v46 }
  0xf9   : > { %v722_v47 = vpop.f32.mrb[0].mxu0 }
  0xfa   : > { %v532_v48 = vpop.f32.mrb[0].mxu1  ;;  %v723_v49 = vpop.f32.mrb[1].mxu0 }
  0xfb   : > { %v724_v50 = vadd.f32 %v723_v49, %v722_v47  ;;  %v755_v51 = vpop.f32.mrb[1].mxu1  ;;  %v725_v52 = vpop.f32.mrb[2].mxu0 }
  0xfc   : > { %v535_v53 = vpop.f32.mrb[2].mxu1  ;;  %v726_v54 = vpop.f32.mrb[3].mxu0 }
  0xfd   : > { %v533_v55 = vadd.f32 %v724_v50, %v532_v48  ;;  %v727_v56 = vadd.f32 %v726_v54, %v725_v52  ;;  %v756_v57 = vpop.f32.mrb[3].mxu1 }
  0xff   : > { %v536_v58 = vadd.f32 %v727_v56, %v535_v53  ;;  %v557_v59 = vmul.f32 %v533_v55, %v533_v55 }
 0x101   : > { %v704_v60 = vpack.c.bf16 %v536_v58, %v533_v55  ;;  %v549_v61 = vadd.f32 %v536_v58, %v533_v55  ;;  %v558_v62 = vmul.f32 %v536_v58, %v536_v58 }
 0x103   : > { %705 = vst [vmem:[%s204_s28] sm:$0xff] %v704_v60   ;;  %v550_v63 = vrot.slane %v549_v61, 4  ;;  %v559_v0 = vadd.f32 %v558_v62, %v557_v59 }
 0x105   : > { %v551_v1 = vadd.f32 %v550_v63, %v549_v61  ;;  %v560_v2 = vrot.slane %v559_v0, 4 }
 0x107   : > { %v552_v3 = vrot.slane %v551_v1, 2  ;;  %v561_v4 = vadd.f32 %v560_v2, %v559_v0 }
 0x109   : > { %v553_v5 = vadd.f32 %v552_v3, %v551_v1  ;;  %v562_v6 = vrot.slane %v561_v4, 2 }
 0x10b   : > { %v554_v7 = vrot.slane %v553_v5, 1  ;;  %v563_v8 = vadd.f32 %v562_v6, %v561_v4 }
 0x10d   : > { %v555_v9 = vadd.f32 %v554_v7, %v553_v5  ;;  %v564_v10 = vrot.slane %v563_v8, 1 }
 0x10f   : > { %556 = vst [vmem:[%s208_s27] sm:$0x1] %v555_v9  ;;  %v565_v11 = vadd.f32 %v564_v10, %v563_v8 }
 0x111   : > { %566 = vst [vmem:[%s208_s27 + $0x1] sm:$0x1] %v565_v11 }
 0x112 PF: > { %s15_s15 = sadd.s32 1, %s797_s15  }
 0x113   : > { %p12_p4 = scmp.ge.s32.totalorder %s15_s15, 4  }
 0x115   :  { %14 = sbr.rel (!%p12_p4) target bundleno = 1 (0x1), region = 74 }

</bundles_post_ra>
